<compile_context>
chip_gen: v7x
topology: tpu7x:2x2x1
jax: 0.10.0
libtpu: 0.0.40
codegen_flags: <defaults>
</compile_context>

<pallas_src>
import jax
import jax.numpy as jnp
from jax.experimental import pallas as pl
from jax.experimental.pallas import tpu as pltpu


def _round_up(n, m):
    return ((n + m - 1) // m) * m


def _attention_kernel(x_ref, score_mat_ref, expand_mat_ref, reduce_mat_ref, out_ref):
    # x_ref:          (B_BLK, L*D)  lane-dense batch slab
    # score_mat_ref:  (L*D, L)      block-diagonal replication of the attention vector
    # expand_mat_ref: (L, L*D)      0/1 segment-broadcast matrix
    # reduce_mat_ref: (L*D, D)      0/1 segment-sum matrix
    # out_ref:        (B_BLK, D)
    x = x_ref[...]

    # Per-row, per-segment attention scores via the MXU (the matmul also does
    # the D-lane reduction, so no cross-lane XLU work on the VPU path).
    scores = jnp.dot(x, score_mat_ref[...],
                     preferred_element_type=jnp.float32)           # (Bb, L)

    # Numerically-stable softmax over the L segments (rows are independent,
    # so garbage in OOB tail rows stays in those rows).
    m = jnp.max(scores, axis=-1, keepdims=True)                    # (Bb, 1)
    e = jnp.exp(scores - m)                                        # (Bb, L)
    denom = jnp.sum(e, axis=-1, keepdims=True)                     # (Bb, 1)
    p = e * pl.reciprocal(denom, approx=True)                      # EUP slot

    # Broadcast each probability across its D lanes (MXU), weight the slab,
    # then segment-sum over L (MXU): out[b,d] = sum_l p[b,l] * x[b, l*D+d].
    p_exp = jnp.dot(p.astype(x.dtype), expand_mat_ref[...],
                    preferred_element_type=jnp.float32)            # (Bb, L*D)
    weighted = x.astype(jnp.float32) * p_exp                       # (Bb, L*D)
    out = jnp.dot(weighted, reduce_mat_ref[...].astype(jnp.float32),
                  preferred_element_type=jnp.float32)              # (Bb, D)
    out_ref[...] = out.astype(out_ref.dtype)


def attention_forward(x, attention_param, *, target_block_bytes=4 * 1024 * 1024):
    """x: [B, L, D], attention_param: [D, 1] -> weighted_sum: [B, D]."""
    B, L, D = x.shape
    dtype = x.dtype
    itemsize = jnp.dtype(dtype).itemsize
    LD = L * D

    # ---- Lane-dense input layout -------------------------------------------
    # (B, L, 32) lane-pads every (8, 128) tile 4x in HBM/VMEM; the flat
    # (B, L*D) slab (256 lanes here) carries only real bytes.
    x_flat = x.reshape(B, LD)

    # ---- Tiny constant matrices for the in-kernel MXU ops -------------------
    w = attention_param.reshape(D).astype(dtype)
    eye_l = jnp.eye(L, dtype=dtype)
    # score matrix  (L*D, L):  S[l*D+d, l'] = w[d] * (l == l')
    score_mat = (eye_l[:, None, :] * w[None, :, None]).reshape(LD, L)
    # expand matrix (L, L*D):  E[l', l*D+d] = (l == l')
    expand_mat = jnp.repeat(eye_l, D, axis=1)
    # reduce matrix (L*D, D):  R[l*D+d, d'] = (d == d')
    reduce_mat = jnp.tile(jnp.eye(D, dtype=dtype), (L, 1))

    # ---- Batch-block sizing --------------------------------------------------
    sub = max(8, 32 // itemsize)                  # sublane multiple: 8 f32, 16 bf16
    lane_row = _round_up(LD, 128) * itemsize      # lane-dense bytes per x row

    # As large as the per-buffer target allows (big DMA tiles amortize the
    # ~0.35us per-grid-step overhead), rounded to the sublane multiple.
    b_blk = _round_up(max(sub, target_block_bytes // lane_row), sub)

    # v7x has two TensorCores: keep >= 2 grid steps so the "parallel" batch
    # axis has something to shard (no effect on 1-TC v5e/v6e).
    if B >= 2 * sub:
        b_blk = min(b_blk, pl.cdiv(pl.cdiv(B, 2), sub) * sub)

    # Keep the whole working set under a 28 MiB soft budget (< the 32 MiB
    # scoped-VMEM ceiling, safe on v5e/v6e/v7x): 2x double-buffered x blocks,
    # ~2 x-block MXU temporaries (p_exp / weighted), output blocks and a few
    # (b_blk, 128) softmax temporaries.
    per_row_vmem = (4 * _round_up(LD, 128) + 5 * _round_up(D, 128)) * itemsize
    budget = 28 << 20
    b_blk = min(b_blk, max(sub, (budget // per_row_vmem) // sub * sub))

    b_blk = min(b_blk, _round_up(B, sub))
    grid = (pl.cdiv(B, b_blk),)

    # Explicit VMEM budget (review feedback), never exceeding 32 MiB.
    vmem_limit = int(min(32 << 20,
                         max(16 << 20, b_blk * per_row_vmem + (2 << 20))))

    # No input padding: the partial tail block is handled by Pallas boundary
    # masking on the output; OOB-read rows never mix into valid rows.
    out = pl.pallas_call(
        _attention_kernel,
        out_shape=jax.ShapeDtypeStruct((B, D), dtype),
        grid_spec=pltpu.PrefetchScalarGridSpec(
            num_scalar_prefetch=0,
            grid=grid,
            in_specs=[
                pl.BlockSpec((b_blk, LD), lambda b: (b, 0)),   # lane-dense x slab
                pl.BlockSpec((LD, L), lambda b: (0, 0)),       # score matrix (resident)
                pl.BlockSpec((L, LD), lambda b: (0, 0)),       # expand matrix (resident)
                pl.BlockSpec((LD, D), lambda b: (0, 0)),       # reduce matrix (resident)
            ],
            out_specs=pl.BlockSpec((b_blk, D), lambda b: (b, 0)),
        ),
        compiler_params=pltpu.CompilerParams(
            dimension_semantics=("parallel",),
            vmem_limit_bytes=vmem_limit),
    )(x_flat, score_mat, expand_mat, reduce_mat)
    return out


def _reference(x, w):
    scores = jnp.squeeze(jnp.matmul(x, w), -1)         # [B, L]
    p = jax.nn.softmax(scores, axis=-1)[..., None]     # [B, L, 1]
    return jnp.sum(x * p, axis=-2)                     # [B, D]


if __name__ == "__main__":
    # Small shapes consistent with the module's forward:
    # x_in: [batch=2, sent_len=8, attention_size=32]
    B, L, D = 2, 8, 32

    key = jax.random.PRNGKey(0)
    kx, kw = jax.random.split(key)

    x = jax.random.normal(kx, (B, L, D), dtype=jnp.float32)

    # Deterministic xavier_normal_ init for the (D, 1) attention parameter:
    # std = sqrt(2 / (fan_in + fan_out)) = sqrt(2 / (D + 1))
    std = (2.0 / (D + 1)) ** 0.5
    attention_param = std * jax.random.normal(kw, (D, 1), dtype=jnp.float32)

    out = attention_forward(x, attention_param)
    out = jax.block_until_ready(out)

    ref = _reference(x, attention_param)
    assert out.shape == (B, D)
    # approx=True EUP reciprocal has ~1e-4 relative error; tolerance reflects that.
    assert jnp.allclose(out, ref, atol=2e-3, rtol=2e-3), float(jnp.max(jnp.abs(out - ref)))

    print("KERNEL_OK")
</pallas_src>

<mosaic_0001>
module attributes {stable_mosaic.version = 11 : i64} {
  func.func @_attention_kernel(%arg0: i32, %arg1: memref<8x256xf32, #tpu.memory_space<vmem>>, %arg2: memref<256x8xf32, #tpu.memory_space<vmem>>, %arg3: memref<8x256xf32, #tpu.memory_space<vmem>>, %arg4: memref<256x32xf32, #tpu.memory_space<vmem>>, %arg5: memref<8x32xf32, #tpu.memory_space<vmem>>) attributes {dimension_semantics = [#tpu.dimension_semantics<parallel>], iteration_bounds = array<i64: 1>, scalar_prefetch = 0 : i64, scratch_operands = 0 : i64, tpu.core_type = #tpu.core_type<tc>, window_params = [{transform_indices = @transform_0, window_bounds = array<i64: 8, 256>}, {pipeline_mode = #tpu.pipeline_mode<synchronous>, transform_indices = @transform_1, window_bounds = array<i64: 256, 8>}, {pipeline_mode = #tpu.pipeline_mode<synchronous>, transform_indices = @transform_2, window_bounds = array<i64: 8, 256>}, {pipeline_mode = #tpu.pipeline_mode<synchronous>, transform_indices = @transform_3, window_bounds = array<i64: 256, 32>}, {transform_indices = @transform_4, window_bounds = array<i64: 8, 32>}]} {
    %c0 = arith.constant 0 : index
    %c0_0 = arith.constant 0 : index
    %0 = vector.load %arg1[%c0, %c0_0] : memref<8x256xf32, #tpu.memory_space<vmem>>, vector<8x256xf32>
    %c0_1 = arith.constant 0 : index
    %c0_2 = arith.constant 0 : index
    %1 = vector.load %arg2[%c0_1, %c0_2] : memref<256x8xf32, #tpu.memory_space<vmem>>, vector<256x8xf32>
    %cst = arith.constant dense<0.000000e+00> : vector<8x8xf32>
    %2 = tpu.matmul %0, %1, %cst {dimension_numbers = #tpu.dot_dimension_numbers<[1], [0], [0], [1], [0, 0, 1, 1], [], []>} : vector<8x256xf32>, vector<256x8xf32>, vector<8x8xf32> -> vector<8x8xf32>
    %cst_3 = arith.constant dense<0xFF800000> : vector<8xf32>
    %3 = vector.multi_reduction <maximumf>, %2, %cst_3 [1] : vector<8x8xf32> to vector<8xf32>
    %4 = vector.shape_cast %3 : vector<8xf32> to vector<8x1xf32>
    %5 = vector.broadcast %4 : vector<8x1xf32> to vector<8x8xf32>
    %6 = arith.subf %2, %5 : vector<8x8xf32>
    %7 = math.exp %6 : vector<8x8xf32>
    %cst_4 = arith.constant dense<0.000000e+00> : vector<8xf32>
    %8 = vector.multi_reduction <add>, %7, %cst_4 [1] : vector<8x8xf32> to vector<8xf32>
    %9 = vector.shape_cast %8 : vector<8xf32> to vector<8x1xf32>
    %10 = tpu.reciprocal %9 {approx = true} : vector<8x1xf32> -> vector<8x1xf32>
    %11 = vector.broadcast %10 : vector<8x1xf32> to vector<8x8xf32>
    %12 = arith.mulf %7, %11 : vector<8x8xf32>
    %c0_5 = arith.constant 0 : index
    %c0_6 = arith.constant 0 : index
    %13 = vector.load %arg3[%c0_5, %c0_6] : memref<8x256xf32, #tpu.memory_space<vmem>>, vector<8x256xf32>
    %cst_7 = arith.constant dense<0.000000e+00> : vector<8x256xf32>
    %14 = tpu.matmul %12, %13, %cst_7 {dimension_numbers = #tpu.dot_dimension_numbers<[1], [0], [0], [1], [0, 0, 1, 1], [], []>} : vector<8x8xf32>, vector<8x256xf32>, vector<8x256xf32> -> vector<8x256xf32>
    %15 = arith.mulf %0, %14 : vector<8x256xf32>
    %c0_8 = arith.constant 0 : index
    %c0_9 = arith.constant 0 : index
    %16 = vector.load %arg4[%c0_8, %c0_9] : memref<256x32xf32, #tpu.memory_space<vmem>>, vector<256x32xf32>
    %cst_10 = arith.constant dense<0.000000e+00> : vector<8x32xf32>
    %17 = tpu.matmul %15, %16, %cst_10 {dimension_numbers = #tpu.dot_dimension_numbers<[1], [0], [0], [1], [0, 0, 1, 1], [], []>} : vector<8x256xf32>, vector<256x32xf32>, vector<8x32xf32> -> vector<8x32xf32>
    %c0_11 = arith.constant 0 : index
    %c0_12 = arith.constant 0 : index
    %18 = vector.load %arg5[%c0_11, %c0_12] : memref<8x32xf32, #tpu.memory_space<vmem>>, vector<8x32xf32>
    tpu.vector_store %arg5[%c0_11, %c0_12], %17 {strides = array<i32>} : memref<8x32xf32, #tpu.memory_space<vmem>>, vector<8x32xf32>,
    return
  }
  func.func @transform_0(%arg0: i32) -> (i32, i32) {
    %c0_i32 = arith.constant 0 : i32
    %c0_i32_0 = arith.constant 0 : i32
    return %arg0, %c0_i32 : i32, i32
  }
  func.func @transform_1(%arg0: i32) -> (i32, i32) {
    %c0_i32 = arith.constant 0 : i32
    %c0_i32_0 = arith.constant 0 : i32
    %c0_i32_1 = arith.constant 0 : i32
    return %c0_i32, %c0_i32_0 : i32, i32
  }
  func.func @transform_2(%arg0: i32) -> (i32, i32) {
    %c0_i32 = arith.constant 0 : i32
    %c0_i32_0 = arith.constant 0 : i32
    %c0_i32_1 = arith.constant 0 : i32
    return %c0_i32, %c0_i32_0 : i32, i32
  }
  func.func @transform_3(%arg0: i32) -> (i32, i32) {
    %c0_i32 = arith.constant 0 : i32
    %c0_i32_0 = arith.constant 0 : i32
    %c0_i32_1 = arith.constant 0 : i32
    return %c0_i32, %c0_i32_0 : i32, i32
  }
  func.func @transform_4(%arg0: i32) -> (i32, i32) {
    %c0_i32 = arith.constant 0 : i32
    %c0_i32_0 = arith.constant 0 : i32
    return %arg0, %c0_i32 : i32, i32
  }
}

</mosaic_0001>

<bundles_post_ra>
// kernel: tpu_custom_call.1
= control target key start
LH: loop header
LB: loop body
LE: loop exit
PB: predicated region body
PF: predicated region fallthrough
CT: control target
= control target key end

     0   :  { %9 = vsyncpa [#allocation3], 0  ;;  %v578_v10 = vmov 1983009808   ;;  %v63_v12 = vlaneseq  ;;  %vm148_vm0 = vcmask 64512   ;;  %vm390_vm1 = vcmask 261120   ;;  %s857_s0 = inlined_call_operand.vmem [shape: f32[2,256], index: 0, kind: input, shape index: {}]   ;;  %s858_s1 = inlined_call_operand.vmem [shape: f32[256,8], index: 1, kind: input, shape index: {}]   ;;  %s859_s2 = inlined_call_operand.vmem [shape: f32[8,256], index: 2, kind: input, shape index: {}]   ;;  %s860_s3 = inlined_call_operand.vmem [shape: f32[256,32], index: 3, kind: input, shape index: {}]   ;;  %s861_s4 = inlined_call_operand.hbm [shape: f32[2,32], index: 4, kind: output, shape index: {}]  }
   0x1   :  { %v38_v0 = vld [vmem:[%s858_s1 + $0x80] sm:$0xff]  ;;  %v39_v1 = vld [vmem:[%s858_s1 + $0x88] sm:$0xff]  ;;  %v40_v5 = vld [vmem:[%s858_s1 + $0x90] sm:$0xff]  ;;  %v61_v11 = vunpack.c.l.s4 %v578_v10 }
   0x2   :  { %v479_v2 = vpack.c.bf16 %v39_v1, %v38_v0  ;;  %v22_v3 = vld [vmem:[%s858_s1] sm:$0xff]  ;;  %v23_v4 = vld [vmem:[%s858_s1 + $0x8] sm:$0xff]  ;;  %v41_v7 = vld [vmem:[%s858_s1 + $0x98] sm:$0xff]  ;;  %v64_v23 = vshrl.u32 %v63_v12, 7 }
   0x3   :  { %v481_v6 = vpack.c.bf16 %v23_v4, %v22_v3  ;;  %v24_v8 = vld [vmem:[%s858_s1 + $0x10] sm:$0xff]  ;;  %v25_v9 = vld [vmem:[%s858_s1 + $0x18] sm:$0xff]  ;;  %v483_v13 = vpack.c.bf16 %v41_v7, %v40_v5  ;;  %v42_v14 = vld [vmem:[%s858_s1 + $0xa0] sm:$0xff]  ;;  %v62_v22 = vunpack.c.0.s8 %v61_v11  ;;  %v579_v11 = vmov 0.0  }
   0x4   :  { %480 = vmatprep.subr.bf16.mxu0 %v479_v2  ;;  %v43_v15 = vld [vmem:[%s858_s1 + $0xa8] sm:$0xff]  ;;  %v485_v16 = vpack.c.bf16 %v25_v9, %v24_v8  ;;  %v26_v18 = vld [vmem:[%s858_s1 + $0x20] sm:$0xff]  ;;  %v44_v20 = vld [vmem:[%s858_s1 + $0xb0] sm:$0xff]  ;;  %229 = vmatprep.mubr.f32.mxu1 %v579_v11 }
   0x5   :  { %482 = vmatpush3.bf16.msra.mxu0 %v481_v6  ;;  %v487_v17 = vpack.c.bf16 %v43_v15, %v42_v14  ;;  %v27_v19 = vld [vmem:[%s858_s1 + $0x28] sm:$0xff]  ;;  %v45_v21 = vld [vmem:[%s858_s1 + $0xb8] sm:$0xff]  ;;  %v28_v26 = vld [vmem:[%s858_s1 + $0x30] sm:$0xff]  ;;  %v662_v30 = vsub.s32 %v62_v22, %v64_v23 }
   0x6   :  { %484 = vmatprep.subr.bf16.mxu0 %v483_v13  ;;  %v489_v24 = vpack.c.bf16 %v27_v19, %v26_v18  ;;  %v491_v25 = vpack.c.bf16 %v45_v21, %v44_v20  ;;  %v29_v27 = vld [vmem:[%s858_s1 + $0x38] sm:$0xff]  ;;  %v46_v28 = vld [vmem:[%s858_s1 + $0xc0] sm:$0xff]  ;;  %v47_v29 = vld [vmem:[%s858_s1 + $0xc8] sm:$0xff] }
   0x7   :  { %v667_v31 = vld [vmem:[%s857_s0] sm:$0xf]  ;;  %v672_v32 = vld [vmem:[%s857_s0 + $0x4] sm:$0xf]  ;;  %v677_v33 = vld [vmem:[%s857_s0 + $0x8] sm:$0xf]  ;;  %v493_v34 = vpack.c.bf16 %v29_v27, %v28_v26  ;;  %v495_v37 = vpack.c.bf16 %v47_v29, %v46_v28 }
   0x8   :  { %v682_v35 = vld [vmem:[%s857_s0 + $0xc] sm:$0xf]  ;;  %v58_v36 = vcombine.low %v667_v31, %v672_v32  ;;  %v30_v38 = vld [vmem:[%s858_s1 + $0x40] sm:$0xff]  ;;  %v48_v41 = vld [vmem:[%s858_s1 + $0xd0] sm:$0xff] }
   0x9   :  { %486 = vmatpush3.bf16.msra.mxu0 %v485_v16  ;;  %v31_v39 = vld [vmem:[%s858_s1 + $0x48] sm:$0xff]  ;;  %v59_v40 = vcombine.low %v677_v33, %v682_v35  ;;  %v49_v42 = vld [vmem:[%s858_s1 + $0xd8] sm:$0xff]  ;;  %v32_v47 = vld [vmem:[%s858_s1 + $0x50] sm:$0xff] }
   0xa   :  { %488 = vmatprep.subr.bf16.mxu0 %v487_v17  ;;  %v66_v43 = vrot.slane %v58_v36, %v662_v30  ;;  %v497_v45 = vpack.c.bf16 %v31_v39, %v30_v38  ;;  %v499_v46 = vpack.c.bf16 %v49_v42, %v48_v41  ;;  %v33_v48 = vld [vmem:[%s858_s1 + $0x58] sm:$0xff]  ;;  %v50_v50 = vld [vmem:[%s858_s1 + $0xe0] sm:$0xff]  ;;  %v51_v51 = vld [vmem:[%s858_s1 + $0xe8] sm:$0xff] }
   0xb   :  { %v73_v44 = vrot.slane %v59_v40, %v662_v30  ;;  %v501_v52 = vpack.c.bf16 %v33_v48, %v32_v47  ;;  %v503_v53 = vpack.c.bf16 %v51_v51, %v50_v50  ;;  %v34_v54 = vld [vmem:[%s858_s1 + $0x60] sm:$0xff]  ;;  %v35_v55 = vld [vmem:[%s858_s1 + $0x68] sm:$0xff]  ;;  %v52_v56 = vld [vmem:[%s858_s1 + $0xf0] sm:$0xff] }
   0xc   :  { %v53_v57 = vld [vmem:[%s858_s1 + $0xf8] sm:$0xff]  ;;  %v505_v58 = vpack.c.bf16 %v35_v55, %v34_v54  ;;  %v36_v60 = vld [vmem:[%s858_s1 + $0x70] sm:$0xff]  ;;  %v161_v9 = vld [vmem:[%s859_s2 + $0x8] sm:$0xff] }
   0xd   :  { %490 = vmatpush3.bf16.msra.mxu0 %v489_v24  ;;  %v75_v49 = vcombine.high %v66_v43, %v73_v44  ;;  %v507_v59 = vpack.c.bf16 %v53_v57, %v52_v56  ;;  %v37_v61 = vld [vmem:[%s858_s1 + $0x78] sm:$0xff]  ;;  %v74_v63 = vcombine.low %v66_v43, %v73_v44  ;;  %v160_v10 = vld [vmem:[%s859_s2] sm:$0xff]  ;;  %165 = vmatprep.subr.mxu1 %v161_v9  ;;  %v281_v13 = vld [vmem:[%s860_s3 + $0x88] sm:$0xff] }
   0xe   :  { %492 = vmatprep.subr.bf16.mxu0 %v491_v25  ;;  %v509_v62 = vpack.c.bf16 %v37_v61, %v36_v60  ;;  %166 = vmatpush1.msra.mxu1 %v160_v10  ;;  %v280_v12 = vld [vmem:[%s860_s3 + $0x80] sm:$0xff]  ;;  %v265_v17 = vld [vmem:[%s860_s3 + $0x8] sm:$0xff]  ;;  %v282_v18 = vld [vmem:[%s860_s3 + $0x90] sm:$0xff] }
   0xf   :  { %142 = vmatprep.mubr.f32.mxu0 %v75_v49  ;;  %v511_v14 = vpack.c.bf16 %v281_v13, %v280_v12  ;;  %v264_v16 = vld [vmem:[%s860_s3] sm:$0xff]  ;;  %v283_v19 = vld [vmem:[%s860_s3 + $0x98] sm:$0xff]  ;;  %v266_v24 = vld [vmem:[%s860_s3 + $0x10] sm:$0xff] }
  0x10   :  { %v513_v21 = vpack.c.bf16 %v265_v17, %v264_v16  ;;  %v515_v23 = vpack.c.bf16 %v283_v19, %v282_v18  ;;  %v267_v25 = vld [vmem:[%s860_s3 + $0x18] sm:$0xff]  ;;  %v284_v26 = vld [vmem:[%s860_s3 + $0xa0] sm:$0xff]  ;;  %v285_v27 = vld [vmem:[%s860_s3 + $0xa8] sm:$0xff] }
  0x11   :  { %494 = vmatpush3.bf16.msra.mxu0 %v493_v34  ;;  %512 = vmatprep.subr.bf16.mxu1 %v511_v14  ;;  %v517_v28 = vpack.c.bf16 %v267_v25, %v266_v24  ;;  %v519_v29 = vpack.c.bf16 %v285_v27, %v284_v26  ;;  %v268_v34 = vld [vmem:[%s860_s3 + $0x20] sm:$0xff]  ;;  %v269_v36 = vld [vmem:[%s860_s3 + $0x28] sm:$0xff]  ;;  %v287_v38 = vld [vmem:[%s860_s3 + $0xb8] sm:$0xff] }
  0x12   :  { %496 = vmatprep.subr.bf16.mxu0 %v495_v37  ;;  %v286_v37 = vld [vmem:[%s860_s3 + $0xb0] sm:$0xff]  ;;  %v521_v39 = vpack.c.bf16 %v269_v36, %v268_v34  ;;  %v271_v42 = vld [vmem:[%s860_s3 + $0x38] sm:$0xff]  ;;  %v288_v44 = vld [vmem:[%s860_s3 + $0xc0] sm:$0xff] }
  0x13   :  { %v523_v40 = vpack.c.bf16 %v287_v38, %v286_v37  ;;  %v270_v41 = vld [vmem:[%s860_s3 + $0x30] sm:$0xff]  ;;  %v272_v47 = vld [vmem:[%s860_s3 + $0x40] sm:$0xff]  ;;  %v273_v48 = vld [vmem:[%s860_s3 + $0x48] sm:$0xff] }
  0x14   :  { %v525_v43 = vpack.c.bf16 %v271_v42, %v270_v41  ;;  %v529_v49 = vpack.c.bf16 %v273_v48, %v272_v47  ;;  %v290_v50 = vld [vmem:[%s860_s3 + $0xd0] sm:$0xff]  ;;  %v291_v51 = vld [vmem:[%s860_s3 + $0xd8] sm:$0xff]  ;;  %v292_v56 = vld [vmem:[%s860_s3 + $0xe0] sm:$0xff] }
  0x15   :  { %498 = vmatpush3.bf16.msra.mxu0 %v497_v45  ;;  %v289_v45 = vld [vmem:[%s860_s3 + $0xc8] sm:$0xff]  ;;  %v275_v54 = vld [vmem:[%s860_s3 + $0x58] sm:$0xff] }
  0x16   :  { %500 = vmatprep.subr.bf16.mxu0 %v499_v46  ;;  %v527_v46 = vpack.c.bf16 %v289_v45, %v288_v44  ;;  %v293_v57 = vld [vmem:[%s860_s3 + $0xe8] sm:$0xff] }
  0x17   :  { %v277_v60 = vld [vmem:[%s860_s3 + $0x68] sm:$0xff] }
  0x19   :  { %502 = vmatpush3.bf16.msra.mxu0 %v501_v52  ;;  %v531_v52 = vpack.c.bf16 %v291_v51, %v290_v50 }
  0x1a   :  { %504 = vmatprep.subr.bf16.mxu0 %v503_v53  ;;  %v274_v53 = vld [vmem:[%s860_s3 + $0x50] sm:$0xff] }
  0x1b   :  { %v533_v55 = vpack.c.bf16 %v275_v54, %v274_v53 }
  0x1d   :  { %506 = vmatpush3.bf16.msra.mxu0 %v505_v58  ;;  %v535_v58 = vpack.c.bf16 %v293_v57, %v292_v56 }
  0x1e   :  { %508 = vmatprep.subr.bf16.mxu0 %v507_v59  ;;  %v276_v59 = vld [vmem:[%s860_s3 + $0x60] sm:$0xff] }
  0x1f   :  { %v537_v61 = vpack.c.bf16 %v277_v60, %v276_v59 }
  0x21   :  { %510 = vmatpush3.bf16.msra.mxu0 %v509_v62  ;;  %v294_v62 = vld [vmem:[%s860_s3 + $0xf0] sm:$0xff] }
  0x24   :  { %143 = vmatmul.mubr.f32.vlgmr.msra.gmra.mrb[0].mxu0 %v74_v63  ;;  %v295_v63 = vld [vmem:[%s860_s3 + $0xf8] sm:$0xff] }
  0xf7   :  { %v441_v0 = vpop.f32.mrb[0].mxu0 }
  0xf8   :  { %v442_v1 = vpop.f32.mrb[1].mxu0 }
  0xf9   :  { %v443_v2 = vadd.f32 %v442_v1, %v441_v0  ;;  %v278_v0 = vld [vmem:[%s860_s3 + $0x70] sm:$0xff]  ;;  %v539_v1 = vpack.c.bf16 %v295_v63, %v294_v62 }
  0xfb   :  { %v149_v3 = vsel %vm148_vm0, %v443_v2, -inf }
  0xfc   :  { %150 = vmax.xlane.f32.xlu0 %v149_v3 }
 0x189   :  { %v151_v4 = vpop.xlane.xlu0 %150 }
 0x18a   :  { %v152_v5 = vsub.f32 %v443_v2, %v151_v4  ;;  %v279_v2 = vld [vmem:[%s860_s3 + $0x78] sm:$0xff] }
 0x18b   :  { %v541_v3 = vpack.c.bf16 %v279_v2, %v278_v0 }
 0x18c   :  { %v153_v6 = vmul.f32 1.442695, %v152_v5 }
 0x18e   :  { %550 = vpow2.f32 %v153_v6 }
 0x198   :  { %v551_v7 = vpop.eup %550 }
 0x199   :  { %v155_v8 = vsel %vm148_vm0, %v551_v7, 0.0 }
 0x19a   :  { %156 = vadd.xlane.f32.xlu0 %v155_v8 }
 0x227   :  { %v157_v15 = vpop.xlane.xlu0 %156 }
 0x228   :  { %552 = vrcp.f32 %v157_v15 }
 0x232   :  { %v553_v20 = vpop.eup %552 }
 0x233   :  { %v159_v22 = vmul.f32 %v553_v20, %v551_v7 }
 0x235   :  { %408 = vmatmul.mubr.msk.f32.vlgmr.msra.gmra.mrb[0].mxu1 %vm148_vm0, %v159_v22 }
 0x236   :  { %514 = vmatpush3.bf16.msra.mxu1 %v513_v21 }
 0x237   :  { %516 = vmatprep.subr.bf16.mxu1 %v515_v23 }
 0x23a   :  { %518 = vmatpush3.bf16.msra.mxu1 %v517_v28 }
 0x23b   :  { %520 = vmatprep.subr.bf16.mxu1 %v519_v29 }
 0x23e   :  { %522 = vmatpush3.bf16.msra.mxu1 %v521_v39 }
 0x23f   :  { %524 = vmatprep.subr.bf16.mxu1 %v523_v40 }
 0x242   :  { %526 = vmatpush3.bf16.msra.mxu1 %v525_v43 }
 0x243   :  { %528 = vmatprep.subr.bf16.mxu1 %v527_v46 }
 0x246   :  { %530 = vmatpush3.bf16.msra.mxu1 %v529_v49 }
 0x247   :  { %532 = vmatprep.subr.bf16.mxu1 %v531_v52 }
 0x24a   :  { %534 = vmatpush3.bf16.msra.mxu1 %v533_v55 }
 0x24b   :  { %536 = vmatprep.subr.bf16.mxu1 %v535_v58 }
 0x24e   :  { %538 = vmatpush3.bf16.msra.mxu1 %v537_v61 }
 0x24f   :  { %540 = vmatprep.subr.bf16.mxu1 %v539_v1 }
 0x252   :  { %542 = vmatpush3.bf16.msra.mxu1 %v541_v3 }
 0x308   :  { %v231_v4 = vpop.f32.mrb[0].mxu1 }
 0x309   :  { %v233_v5 = vpop.f32.mrb[1].mxu1 }
 0x30a   :  { %v238_v6 = vcombine.low %v231_v4, %v233_v5  ;;  %v239_v7 = vcombine.high %v231_v4, %v233_v5 }
 0x30c   :  { %v246_v8 = vrot.slane %v238_v6, %v662_v30  ;;  %v253_v9 = vrot.slane %v239_v7, %v662_v30 }
 0x30e   :  { %v254_v10 = vcombine.high %v246_v8, %v246_v8  ;;  %v255_v11 = vcombine.high %v253_v9, %v253_v9  ;;  %v260_v12 = vmul.f32 %v246_v8, %v667_v31  ;;  %v262_v14 = vmul.f32 %v253_v9, %v677_v33 }
 0x310   :  { %v261_v13 = vmul.f32 %v254_v10, %v672_v32  ;;  %v263_v15 = vmul.f32 %v255_v11, %v682_v35 }
 0x312   :  { %v300_v16 = vcombine.low %v260_v12, %v261_v13  ;;  %v301_v17 = vcombine.low %v262_v14, %v263_v15 }
 0x314   :  { %v308_v18 = vrot.slane %v300_v16, %v662_v30  ;;  %v315_v19 = vrot.slane %v301_v17, %v662_v30 }
 0x316   :  { %v317_v20 = vcombine.high %v308_v18, %v315_v19  ;;  %v316_v21 = vcombine.low %v308_v18, %v315_v19 }
 0x318   :  { %384 = vmatprep.mubr.f32.mxu1 %v317_v20 }
 0x319   :  { %385 = vmatmul.mubr.f32.vlgmr.msra.gmra.mrb[2].mxu1 %v316_v21 }
 0x3ec   :  { %v476_v22 = vpop.f32.mrb[2].mxu1 }
 0x3ed   :  { %v477_v23 = vpop.f32.mrb[3].mxu1 }
 0x3ee   :  { %v478_v31 = vadd.f32 %v477_v23, %v476_v22 }
 0x3f0   :  { %391 = vst.msk [vmem:[#allocation2] sm:$0xff] %vm390_vm1, %v478_v31 }
 0x3f1   :  { %396 = vsyncadd [#allocation3], 96  ;;  %s580_s3 = smov [#allocation2]  }
 0x3f2   :  { %s397_s2 = sshll.u32 %s580_s3, 4  ;;  %s398_s2 = int_to_ptr.vmem [resolvable:$true] %s397_s2 }
 0x3f3   :  { %s554_s16 = scalar_lea.vmem %s398_s2, 32  ;;  %s558_s17 = scalar_lea.vmem %s398_s2, 128 }
 0x3f4   :  { %p555_p0 = scmp.ne.s32.totalorder %s398_s2, %s554_s16  ;;  %p559_p1 = scmp.lt.s32.totalorder %s398_s2, %s398_s2 }
 0x3f5   :  { %p560_p2 = scmp.lt.s32.totalorder %s558_s17, %s554_s16 }
 0x3f7   :  { %p561_p3 = por %p560_p2, %p559_p1 }
 0x3f9   :  { %p562_p4 = pnand %p561_p3, %p555_p0 }
 0x3fb   :  { %565 = shalt.err (!%p562_p4)
}
 0x3fc   :  { %s566_s20 = scalar_lea.hbm %s861_s4, 32 }
 0x3fd   :  { %p567_p5 = scmp.ne.s32.totalorder %s861_s4, %s566_s20  ;;  %p570_p6 = scmp.lt.u32.totalorder %s566_s20, %s861_s4 }
 0x3ff   :  { %p572_p7 = pnand %p570_p6, %p567_p5 }
 0x401   :  { %575 = shalt.err (!%p572_p7)
}
 0x402   :  { %s581_s25 = smov 32   ;;  %s582_s26 = smov 2  }
 0x403   :  { %403 = dma.vmem_to_hbm [thread:$0]  %s398_s2, 32, %s861_s4, [#allocation3], %s581_s25, %s581_s25, %s582_s26  }
 0x404   :  { %576 = dma.done.wait [#allocation3], 128  }
 0x405   :  { %577 = vsyncadd [#allocation3], 4294967168 }
 0x406   :  { %407 = vsyncpa [#allocation3], 1 }

</bundles_post_ra>
